<compile_context>
chip_gen: v6e
topology: v6e:2x2x1
jax: 0.10.0
libtpu: 0.0.40
codegen_flags: <defaults>
</compile_context>

<pallas_src>
import functools

import jax
import jax.numpy as jnp
from jax.experimental import pallas as pl
from jax.experimental.pallas import tpu as pltpu


# ---------------------------------------------------------------------------
# Tiled matmul kernel (for the four bias-free linear projections).
# ---------------------------------------------------------------------------
def _matmul_kernel(a_ref, b_ref, o_ref, acc_ref):
    @pl.when(pl.program_id(2) == 0)
    def _():
        acc_ref[...] = jnp.zeros_like(acc_ref)

    acc_ref[...] += jnp.dot(
        a_ref[...], b_ref[...], preferred_element_type=jnp.float32
    )

    @pl.when(pl.program_id(2) == pl.num_programs(2) - 1)
    def _():
        o_ref[...] = acc_ref[...].astype(o_ref.dtype)


def _pick_block(dim, target, align):
    """Largest tile <= target that is a multiple of `align` and divides `dim`,
    else the full dim (block == full array dim always satisfies the (8,128)
    constraint and avoids ragged / padded blocks)."""
    if dim <= target:
        return dim
    t = (target // align) * align
    while t >= align:
        if dim % t == 0:
            return t
        t -= align
    return dim


def _linear(x2, w, *, tm=256, tn=256, tk=512):
    """y = x2 @ w with an f32 accumulator. x2: (M, K), w: (K, N)."""
    M, K = x2.shape
    Kw, N = w.shape
    assert K == Kw
    bm = _pick_block(M, tm, 8)
    bn = _pick_block(N, tn, 128)
    bk = _pick_block(K, tk, 128)
    grid = (M // bm, N // bn, K // bk)

    return pl.pallas_call(
        _matmul_kernel,
        out_shape=jax.ShapeDtypeStruct((M, N), x2.dtype),
        grid_spec=pltpu.PrefetchScalarGridSpec(
            num_scalar_prefetch=0,
            grid=grid,
            in_specs=[
                pl.BlockSpec((bm, bk), lambda i, j, k: (i, k)),
                pl.BlockSpec((bk, bn), lambda i, j, k: (k, j)),
            ],
            out_specs=pl.BlockSpec((bm, bn), lambda i, j, k: (i, j)),
            scratch_shapes=[pltpu.VMEM((bm, bn), jnp.float32)],
        ),
        compiler_params=pltpu.CompilerParams(
            dimension_semantics=("parallel", "parallel", "arbitrary"),
            vmem_limit_bytes=32 * 1024 * 1024,
        ),
    )(x2, w)


# ---------------------------------------------------------------------------
# Scaled-dot-product-attention kernel (one (batch, head) pair per grid step).
# ---------------------------------------------------------------------------
def _attn_kernel(q_ref, k_ref, v_ref, o_ref, *, scale):
    q = q_ref[0].astype(jnp.float32)            # (L, Dh)
    k = k_ref[0].astype(jnp.float32)            # (L, Dh)
    v = v_ref[0].astype(jnp.float32)            # (L, Dh)
    s = jnp.dot(q, k.T, preferred_element_type=jnp.float32) * scale   # (L, L)
    m = jnp.max(s, axis=-1, keepdims=True)
    p = jnp.exp(s - m)
    l = jnp.sum(p, axis=-1, keepdims=True)
    o = jnp.dot(p, v, preferred_element_type=jnp.float32) / l
    o_ref[0] = o.astype(o_ref.dtype)


def _attn_kernel_masked(q_ref, k_ref, v_ref, mask_ref, o_ref, *, scale):
    q = q_ref[0].astype(jnp.float32)
    k = k_ref[0].astype(jnp.float32)
    v = v_ref[0].astype(jnp.float32)
    s = jnp.dot(q, k.T, preferred_element_type=jnp.float32) * scale
    s = s + mask_ref[0].astype(jnp.float32)     # additive attention mask
    m = jnp.max(s, axis=-1, keepdims=True)
    p = jnp.exp(s - m)
    l = jnp.sum(p, axis=-1, keepdims=True)
    o = jnp.dot(p, v, preferred_element_type=jnp.float32) / l
    o_ref[0] = o.astype(o_ref.dtype)


def _sdpa(q, k, v, scale, mask=None):
    """q, k, v: (B*H, L, Dh); mask: optional additive f32 (B*H, L, L)."""
    BH, L, Dh = q.shape
    qkv_spec = pl.BlockSpec((1, L, Dh), lambda i: (i, 0, 0))
    out_spec = pl.BlockSpec((1, L, Dh), lambda i: (i, 0, 0))

    if mask is None:
        kernel = functools.partial(_attn_kernel, scale=scale)
        in_specs = [qkv_spec, qkv_spec, qkv_spec]
        operands = (q, k, v)
    else:
        kernel = functools.partial(_attn_kernel_masked, scale=scale)
        in_specs = [qkv_spec, qkv_spec, qkv_spec,
                    pl.BlockSpec((1, L, L), lambda i: (i, 0, 0))]
        operands = (q, k, v, mask)

    # TODO(synk): for long sequences, tile L with a flash-style online softmax
    # (kv grid axis + m/l/acc scratch) instead of one full (L, L) score tile.
    return pl.pallas_call(
        kernel,
        out_shape=jax.ShapeDtypeStruct((BH, L, Dh), q.dtype),
        grid_spec=pltpu.PrefetchScalarGridSpec(
            num_scalar_prefetch=0,
            grid=(BH,),
            in_specs=in_specs,
            out_specs=out_spec,
        ),
        compiler_params=pltpu.CompilerParams(
            dimension_semantics=("parallel",),
            vmem_limit_bytes=32 * 1024 * 1024,
        ),
    )(*operands)


# ---------------------------------------------------------------------------
# Full Attention.forward
# ---------------------------------------------------------------------------
def attention_forward(x, wq, wk, wv, wo, *, num_heads, head_dim, mask=None):
    B, L, D = x.shape
    scale = head_dim ** (-0.5)
    x2 = x.reshape(B * L, D)

    q = _linear(x2, wq)          # (B*L, H*Dh)
    k = _linear(x2, wk)
    v = _linear(x2, wv)

    def split_heads(t):
        return (t.reshape(B, L, num_heads, head_dim)
                 .transpose(0, 2, 1, 3)
                 .reshape(B * num_heads, L, head_dim))

    qh, kh, vh = split_heads(q), split_heads(k), split_heads(v)

    mh = None
    if mask is not None:
        m = mask
        if m.dtype == jnp.bool_:
            # bool mask: True = attend, False = masked out (like torch SDPA).
            m = jnp.where(m, 0.0, -1e30).astype(jnp.float32)
        m = jnp.broadcast_to(m, (B, num_heads, L, L)).astype(jnp.float32)
        mh = m.reshape(B * num_heads, L, L)

    # TODO(synk): attention_dropout (training mode) not implemented; eval
    # forward uses dropout_p = 0.0, so this matches the reference semantics.
    oh = _sdpa(qh, kh, vh, scale, mh)                       # (B*H, L, Dh)

    o = (oh.reshape(B, num_heads, L, head_dim)
           .transpose(0, 2, 1, 3)
           .reshape(B * L, num_heads * head_dim))
    out = _linear(o, wo)                                    # (B*L, D)
    return out.reshape(B, L, D)


# ---------------------------------------------------------------------------
# Pure-JAX reference (matches torch forward with dropout_p=0).
# ---------------------------------------------------------------------------
def attention_reference(x, wq, wk, wv, wo, *, num_heads, head_dim, mask=None):
    B, L, D = x.shape
    scale = head_dim ** (-0.5)
    q = (x @ wq).reshape(B, L, num_heads, head_dim).transpose(0, 2, 1, 3)
    k = (x @ wk).reshape(B, L, num_heads, head_dim).transpose(0, 2, 1, 3)
    v = (x @ wv).reshape(B, L, num_heads, head_dim).transpose(0, 2, 1, 3)
    s = jnp.einsum("bhqd,bhkd->bhqk", q, k) * scale
    if mask is not None:
        m = mask
        if m.dtype == jnp.bool_:
            m = jnp.where(m, 0.0, -1e30).astype(jnp.float32)
        s = s + m
    p = jax.nn.softmax(s, axis=-1)
    o = jnp.einsum("bhqk,bhkd->bhqd", p, v)
    o = o.transpose(0, 2, 1, 3).reshape(B, L, num_heads * head_dim)
    return o @ wo


if __name__ == "__main__":
    key = jax.random.PRNGKey(0)
    batch, seq, hidden = 2, 8, 32
    num_heads, head_dim = 4, 8

    kx, kq, kk, kv, ko = jax.random.split(key, 5)
    x = jax.random.normal(kx, (batch, seq, hidden), dtype=jnp.float32)
    # nn.Linear(bias=False) weights, stored as (in_features, out_features)
    # (torch weight transposed) so y = x @ w == torch's x @ W.T.
    wq = jax.random.normal(kq, (hidden, num_heads * head_dim), jnp.float32) * 0.05
    wk = jax.random.normal(kk, (hidden, num_heads * head_dim), jnp.float32) * 0.05
    wv = jax.random.normal(kv, (hidden, num_heads * head_dim), jnp.float32) * 0.05
    wo = jax.random.normal(ko, (num_heads * head_dim, hidden), jnp.float32) * 0.05

    # --- no mask (default forward) ---
    out = attention_forward(x, wq, wk, wv, wo,
                            num_heads=num_heads, head_dim=head_dim)
    out = jax.block_until_ready(out)
    ref = attention_reference(x, wq, wk, wv, wo,
                              num_heads=num_heads, head_dim=head_dim)
    assert out.shape == x.shape and out.dtype == x.dtype
    assert jnp.allclose(out, ref, atol=1e-4, rtol=1e-4), "mismatch (no mask)"

    # --- with a boolean causal mask (SDPA attn_mask path) ---
    causal = jnp.tril(jnp.ones((seq, seq), dtype=jnp.bool_))
    out_m = attention_forward(x, wq, wk, wv, wo, num_heads=num_heads,
                              head_dim=head_dim, mask=causal)
    out_m = jax.block_until_ready(out_m)
    ref_m = attention_reference(x, wq, wk, wv, wo, num_heads=num_heads,
                                head_dim=head_dim, mask=causal)
    assert jnp.allclose(out_m, ref_m, atol=1e-4, rtol=1e-4), "mismatch (mask)"

    print("KERNEL_OK")
</pallas_src>

<mosaic_0001>
module attributes {stable_mosaic.version = 11 : i64} {
  func.func @_matmul_kernel(%arg0: i32, %arg1: i32, %arg2: i32, %arg3: memref<16x32xf32, #tpu.memory_space<vmem>>, %arg4: memref<32x32xf32, #tpu.memory_space<vmem>>, %arg5: memref<16x32xf32, #tpu.memory_space<vmem>>, %arg6: memref<16x32xf32, #tpu.memory_space<vmem>>) attributes {dimension_semantics = [#tpu.dimension_semantics<parallel>, #tpu.dimension_semantics<parallel>, #tpu.dimension_semantics<arbitrary>], iteration_bounds = array<i64: 1, 1, 1>, scalar_prefetch = 0 : i64, scratch_operands = 1 : i64, tpu.core_type = #tpu.core_type<tc>, window_params = [{transform_indices = @transform_0, window_bounds = array<i64: 16, 32>}, {transform_indices = @transform_1, window_bounds = array<i64: 32, 32>}, {transform_indices = @transform_2, window_bounds = array<i64: 16, 32>}]} {
    %c0_i32 = arith.constant 0 : i32
    %0 = arith.cmpi eq, %arg2, %c0_i32 : i32
    %1 = arith.extui %0 : i1 to i32
    %c0_i32_0 = arith.constant 0 : i32
    %2 = arith.cmpi ne, %1, %c0_i32_0 : i32
    scf.if %2 {
      %cst_10 = arith.constant 0.000000e+00 : f32
      %12 = vector.broadcast %cst_10 : f32 to vector<16x32xf32>
      %c0_11 = arith.constant 0 : index
      %c0_12 = arith.constant 0 : index
      %13 = vector.load %arg6[%c0_11, %c0_12] : memref<16x32xf32, #tpu.memory_space<vmem>>, vector<16x32xf32>
      tpu.vector_store %arg6[%c0_11, %c0_12], %12 {strides = array<i32>} : memref<16x32xf32, #tpu.memory_space<vmem>>, vector<16x32xf32>,
    } else {
    }
    %c0 = arith.constant 0 : index
    %c0_1 = arith.constant 0 : index
    %3 = vector.load %arg6[%c0, %c0_1] : memref<16x32xf32, #tpu.memory_space<vmem>>, vector<16x32xf32>
    %c0_2 = arith.constant 0 : index
    %c0_3 = arith.constant 0 : index
    %4 = vector.load %arg3[%c0_2, %c0_3] : memref<16x32xf32, #tpu.memory_space<vmem>>, vector<16x32xf32>
    %c0_4 = arith.constant 0 : index
    %c0_5 = arith.constant 0 : index
    %5 = vector.load %arg4[%c0_4, %c0_5] : memref<32x32xf32, #tpu.memory_space<vmem>>, vector<32x32xf32>
    %cst = arith.constant dense<0.000000e+00> : vector<16x32xf32>
    %6 = tpu.matmul %4, %5, %cst {dimension_numbers = #tpu.dot_dimension_numbers<[1], [0], [0], [1], [0, 0, 1, 1], [], []>} : vector<16x32xf32>, vector<32x32xf32>, vector<16x32xf32> -> vector<16x32xf32>
    %7 = arith.addf %3, %6 : vector<16x32xf32>
    %c0_6 = arith.constant 0 : index
    %c0_7 = arith.constant 0 : index
    %8 = vector.load %arg6[%c0_6, %c0_7] : memref<16x32xf32, #tpu.memory_space<vmem>>, vector<16x32xf32>
    tpu.vector_store %arg6[%c0_6, %c0_7], %7 {strides = array<i32>} : memref<16x32xf32, #tpu.memory_space<vmem>>, vector<16x32xf32>,
    %c0_i32_8 = arith.constant 0 : i32
    %9 = arith.cmpi eq, %arg2, %c0_i32_8 : i32
    %10 = arith.extui %9 : i1 to i32
    %c0_i32_9 = arith.constant 0 : i32
    %11 = arith.cmpi ne, %10, %c0_i32_9 : i32
    scf.if %11 {
      %c0_10 = arith.constant 0 : index
      %c0_11 = arith.constant 0 : index
      %12 = vector.load %arg6[%c0_10, %c0_11] : memref<16x32xf32, #tpu.memory_space<vmem>>, vector<16x32xf32>
      %c0_12 = arith.constant 0 : index
      %c0_13 = arith.constant 0 : index
      %13 = vector.load %arg5[%c0_12, %c0_13] : memref<16x32xf32, #tpu.memory_space<vmem>>, vector<16x32xf32>
      tpu.vector_store %arg5[%c0_12, %c0_13], %12 {strides = array<i32>} : memref<16x32xf32, #tpu.memory_space<vmem>>, vector<16x32xf32>,
    } else {
    }
    return
  }
  func.func @transform_0(%arg0: i32, %arg1: i32, %arg2: i32) -> (i32, i32) {
    %c0_i32 = arith.constant 0 : i32
    return %arg0, %arg2 : i32, i32
  }
  func.func @transform_1(%arg0: i32, %arg1: i32, %arg2: i32) -> (i32, i32) {
    %c0_i32 = arith.constant 0 : i32
    return %arg2, %arg1 : i32, i32
  }
  func.func @transform_2(%arg0: i32, %arg1: i32, %arg2: i32) -> (i32, i32) {
    %c0_i32 = arith.constant 0 : i32
    return %arg0, %arg1 : i32, i32
  }
}

</mosaic_0001>

<bundles_post_ra>
// kernel: tpu_custom_call.1
= control target key start
LH: loop header
LB: loop body
LE: loop exit
PB: predicated region body
PF: predicated region fallthrough
CT: control target
= control target key end

     0   :  { %7 = vsyncpa [#allocation4], 0  ;;  %s304_s0 = inlined_call_operand.hbm [shape: f32[16,32], index: 0, kind: input, shape index: {}]   ;;  %s305_s1 = inlined_call_operand.hbm [shape: f32[32,32], index: 1, kind: input, shape index: {}]   ;;  %s306_s2 = inlined_call_operand.hbm [shape: f32[16,32], index: 2, kind: output, shape index: {}]  }
   0x1   :  { %8 = vsyncpa [#allocation7], 0 }
   0x2   :  { %9 = vsyncpa [#allocation5], 0  ;;  %s257_s9 = smov [#allocation3]  }
   0x3   :  { %s15_s10 = sshll.u32 %s257_s9, 4  ;;  %s16_s10 = int_to_ptr.vmem [resolvable:$true] %s15_s10 }
   0x4   :  { %s199_s11 = scalar_lea.vmem %s16_s10, 256  ;;  %p204_p1 = scmp.lt.s32.totalorder %s16_s10, %s16_s10 }
   0x5   :  { %p200_p0 = scmp.ne.s32.totalorder %s16_s10, %s199_s11  ;;  %p205_p2 = scmp.lt.s32.totalorder %s199_s11, %s199_s11 }
   0x7   :  { %p206_p3 = por %p205_p2, %p204_p1 }
   0x9   :  { %p207_p4 = pnand %p206_p3, %p200_p0 }
   0xb   :  { %210 = shalt.err (!%p207_p4)
}
   0xc   :  { %s258_s12 = smov 128   ;;  %s259_s13 = smov 8  }
   0xd   :  { %21 = dma.hbm_to_vmem [thread:$0]  %s304_s0, 256, %s16_s10, [#allocation4], %s258_s12, %s258_s12, %s259_s13  }
   0xe   :  { %s260_s16 = smov [#allocation6]  }
   0xf   :  { %s27_s17 = sshll.u32 %s260_s16, 4  ;;  %s28_s17 = int_to_ptr.vmem [resolvable:$true] %s27_s17 }
  0x10   :  { %s219_s18 = scalar_lea.vmem %s28_s17, 512  ;;  %p224_p6 = scmp.lt.s32.totalorder %s28_s17, %s28_s17 }
  0x11   :  { %p220_p5 = scmp.ne.s32.totalorder %s28_s17, %s219_s18  ;;  %p225_p7 = scmp.lt.s32.totalorder %s219_s18, %s219_s18 }
  0x13   :  { %p226_p8 = por %p225_p7, %p224_p6 }
  0x15   :  { %p227_p9 = pnand %p226_p8, %p220_p5 }
  0x17   :  { %230 = shalt.err (!%p227_p9)
}
  0x18   :  { %33 = dma.hbm_to_vmem [thread:$0]  %s305_s1, 512, %s28_s17, [#allocation7], %s258_s12, %s258_s12, %s259_s13  }
  0x19   :  { %251 = dma.done.wait [#allocation4], 256  }
  0x1a   :  { %252 = vsyncadd [#allocation4], 4294967040 }
  0x1b   :  { %253 = dma.done.wait [#allocation7], 512  }
  0x1c   :  { %254 = vsyncadd [#allocation7], 4294966784  ;;  %vm44_vm0 = vcmask 261120   ;;  %v261_v0 = vmov 0.0   ;;  %v54_v1 = vld [vmem:[#allocation6 + $0x18] sm:$0xff]  ;;  %v53_v2 = vld [vmem:[#allocation6 + $0x10] sm:$0xff] }
  0x1d   :  { %46 = vst.msk [vmem:[#allocation2 + $0x8] sm:$0xff] %vm44_vm0, %v261_v0  ;;  %45 = vst.msk [vmem:[#allocation2] sm:$0xff] %vm44_vm0, %v261_v0  ;;  %174 = vmatprep.subr.mxu0 %v54_v1  ;;  %v49_v3 = vld [vmem:[#allocation3] sm:$0xff]  ;;  %v52_v4 = vld [vmem:[#allocation6 + $0x8] sm:$0xff]  ;;  %s262_s0 = smov [#allocation8]  }
  0x1e   :  { %175 = vmatpush3.msra.mxu0 %v54_v1  ;;  %182 = vmatprep.mubr.msk.f32.mxu0 %vm44_vm0, %v49_v3  ;;  %v51_v5 = vld [vmem:[#allocation6] sm:$0xff]  ;;  %v50_v6 = vld [vmem:[#allocation3 + $0x8] sm:$0xff]  ;;  %s153_s1 = sshll.u32 %s262_s0, 4  ;;  %s154_s1 = int_to_ptr.vmem [resolvable:$true] %s153_s1 }
  0x1f   :  { %176 = vmatprep.subr.mxu0 %v53_v2  ;;  %s231_s21 = scalar_lea.vmem %s154_s1, 256  ;;  %p236_p11 = scmp.lt.s32.totalorder %s154_s1, %s154_s1 }
  0x20   :  { %177 = vmatpush3.msra.mxu0 %v53_v2  ;;  %p232_p10 = scmp.ne.s32.totalorder %s154_s1, %s231_s21  ;;  %p237_p12 = scmp.lt.s32.totalorder %s231_s21, %s231_s21 }
  0x21   :  { %178 = vmatprep.subr.mxu0 %v52_v4 }
  0x22   :  { %179 = vmatpush3.msra.mxu0 %v52_v4  ;;  %p238_p13 = por %p237_p12, %p236_p11 }
  0x23   :  { %180 = vmatprep.subr.mxu0 %v51_v5 }
  0x24   :  { %181 = vmatpush3.msra.mxu0 %v51_v5  ;;  %v48_v7 = vld [vmem:[#allocation2 + $0x8] sm:$0xff]  ;;  %v47_v9 = vld [vmem:[#allocation2] sm:$0xff]  ;;  %p239_p0 = pnand %p238_p13, %p232_p10 }
  0x25   :  { %183 = vmatmul.mubr.msk.f32.vlgmr.msra.gmra.mxu0 %vm44_vm0, %v50_v6 }
  0xe5   :  { %v184_v8 = vpop.f32.mrf.mxu0 }
  0xe6   :  { %v138_v10 = vadd.f32 %v184_v8, %v48_v7 }
  0xe7   :  { %v128_v11 = vpop.f32.mrf.mxu0 }
  0xe8   :  { %140 = vst.msk [vmem:[#allocation2 + $0x8] sm:$0xff] %vm44_vm0, %v138_v10  ;;  %v137_v12 = vadd.f32 %v128_v11, %v47_v9 }
  0xea   :  { %139 = vst.msk [vmem:[#allocation2] sm:$0xff] %vm44_vm0, %v137_v12 }
  0xef   :  { %v145_v13 = vld [vmem:[#allocation2 + $0x8] sm:$0xff] }
  0xf0   :  { %147 = vst.msk [vmem:[#allocation8 + $0x8] sm:$0xff] %vm44_vm0, %v145_v13 }
  0xf1   :  { %v144_v14 = vld [vmem:[#allocation2] sm:$0xff] }
  0xf2   :  { %146 = vst.msk [vmem:[#allocation8] sm:$0xff] %vm44_vm0, %v144_v14 }
  0xf3   :  { %242 = shalt.err (!%p239_p0)
}
  0xf4   :  { %159 = dma.vmem_to_hbm [thread:$0]  %s154_s1, 256, %s306_s2, [#allocation5], %s258_s12, %s258_s12, %s259_s13  }
  0xf5   :  { %255 = dma.done.wait [#allocation5], 256  }
  0xf6   :  { %256 = vsyncadd [#allocation5], 4294967040 }
  0xf7   :  { %163 = vsyncpa [#allocation4], 1 }
  0xf8   :  { %164 = vsyncpa [#allocation7], 1 }
  0xf9   :  { %165 = vsyncpa [#allocation5], 1 }

</bundles_post_ra>
